<compile_context>
chip_gen: v7x
topology: tpu7x:2x2x1
jax: 0.10.0
libtpu: 0.0.40
codegen_flags: <defaults>
</compile_context>

<pallas_src>
import jax
import jax.numpy as jnp
from jax.experimental import pallas as pl
from jax.experimental.pallas import tpu as pltpu


def _round_up(x, m):
    return ((x + m - 1) // m) * m


def mlp_kernel(x_ref, w1_ref, b1_ref, w2_ref, b2_ref, w3_ref, b3_ref,
               w4t_ref, b4_ref, o_ref):
    # fc1..fc3 on the MXU: bf16 operands (x cast in-kernel), f32 accumulation,
    # f32 bias + ReLU epilogues.
    x = x_ref[...].astype(jnp.bfloat16)
    h = jnp.dot(x, w1_ref[...], preferred_element_type=jnp.float32)
    h = jnp.maximum(h + b1_ref[...], 0.0)

    h = jnp.dot(h.astype(jnp.bfloat16), w2_ref[...],
                preferred_element_type=jnp.float32)
    h = jnp.maximum(h + b2_ref[...], 0.0)

    h = jnp.dot(h.astype(jnp.bfloat16), w3_ref[...],
                preferred_element_type=jnp.float32)
    h = jnp.maximum(h + b3_ref[...], 0.0)

    # fc4 (20 -> 2): an MXU matmul would be >98% padding, so use two VPU
    # broadcast-multiplies + cross-lane (XLU) reductions and assemble the
    # result as a narrow 2-lane tile.
    s0 = jnp.sum(h * w4t_ref[0:1, :], axis=-1, keepdims=True)   # (TB, 1)
    s1 = jnp.sum(h * w4t_ref[1:2, :], axis=-1, keepdims=True)   # (TB, 1)
    z = jnp.concatenate([s0, s1], axis=-1) + b4_ref[...]        # (TB, 2)
    z = jnp.maximum(z, 0.0)                                     # F.relu(fc4(x)) — per spec
    o_ref[...] = jax.nn.sigmoid(z).astype(o_ref.dtype)          # F.sigmoid


def prepare_params(params):
    """One-time weight padding + bf16 casting (hoisted off the per-call path)."""
    (w1, b1), (w2, b2), (w3, b3), (w4, b4) = params
    F, d1 = w1.shape
    d2, d3, d4 = w2.shape[1], w3.shape[1], w4.shape[1]
    H1 = _round_up(d1, 128)        # 200 -> 256
    H2 = _round_up(d2, 128)        # 200 -> 256
    H3 = _round_up(d3, 128)        # 20  -> 128 (zero padding is numerically inert)

    w1p = jnp.zeros((F, H1), jnp.bfloat16).at[:, :d1].set(w1.astype(jnp.bfloat16))
    w2p = jnp.zeros((H1, H2), jnp.bfloat16).at[:d1, :d2].set(w2.astype(jnp.bfloat16))
    w3p = jnp.zeros((H2, H3), jnp.bfloat16).at[:d2, :d3].set(w3.astype(jnp.bfloat16))
    b1p = jnp.zeros((1, H1), jnp.float32).at[:, :d1].set(b1)
    b2p = jnp.zeros((1, H2), jnp.float32).at[:, :d2].set(b2)
    b3p = jnp.zeros((1, H3), jnp.float32).at[:, :d3].set(b3)
    w4t = jnp.zeros((d4, H3), jnp.float32).at[:, :d3].set(w4.T)   # (2, H3) f32
    b4p = b4.reshape(1, d4).astype(jnp.float32)                   # (1, 2)  f32
    return (w1p, b1p, w2p, b2p, w3p, b3p, w4t, b4p)


# 4096-row cap: ~12-16 MiB of live x/out/intermediate f32 per step — safe on
# v5e/v6e (128 MiB VMEM) and v7x (64 MiB physical / 32 MiB scoped default).
_ROWS_CAP = 4096


@jax.jit
def net_forward(x, prepared):
    """Fused Net forward. x: (B, features) f32; returns (B, 2) f32."""
    w1p, b1p, w2p, b2p, w3p, b3p, w4t, b4p = prepared
    B, F = x.shape
    H1, H2, H3 = w1p.shape[1], w2p.shape[1], w3p.shape[1]
    OUT = b4p.shape[1]

    # Batch tiling: large tiles to amortize the ~0.35 us/step overhead, but at
    # least 2 (even) grid steps once B >= 16 so v7x's two TensorCores both get
    # work via the "parallel" batch axis.
    n_steps = max(1, pl.cdiv(B, _ROWS_CAP))
    if B >= 16:
        n_steps = max(n_steps, 2)
    if n_steps > 1 and n_steps % 2:
        n_steps += 1
    tile_b = _round_up(pl.cdiv(B, n_steps), 8)
    Bp = tile_b * n_steps

    if Bp != B:
        x = jnp.pad(x, ((0, Bp - B), (0, 0)))   # batch pad only; F stays unpadded

    const = lambda i: (0, 0)   # weights/biases: VMEM-resident across grid steps
    out = pl.pallas_call(
        mlp_kernel,
        out_shape=jax.ShapeDtypeStruct((Bp, OUT), jnp.float32),
        grid=(n_steps,),
        in_specs=[
            pl.BlockSpec((tile_b, F), lambda i: (i, 0)),   # x, unpadded feature dim
            pl.BlockSpec((F, H1), const),
            pl.BlockSpec((1, H1), const),
            pl.BlockSpec((H1, H2), const),
            pl.BlockSpec((1, H2), const),
            pl.BlockSpec((H2, H3), const),
            pl.BlockSpec((1, H3), const),
            pl.BlockSpec((w4t.shape[0], H3), const),
            pl.BlockSpec((1, OUT), const),
        ],
        out_specs=pl.BlockSpec((tile_b, OUT), lambda i: (i, 0)),  # true (B, 2) output
        compiler_params=pltpu.CompilerParams(
            dimension_semantics=("parallel",),   # megacore sharding on v7x
        ),
    )(x, w1p, b1p, w2p, b2p, w3p, b3p, w4t, b4p)

    return out[:B] if Bp != B else out


def init_params(key, features):
    """Deterministic init (uniform, PyTorch-Linear-like bounds), stored (in, out)."""
    dims = [(features, 200), (200, 200), (200, 20), (20, 2)]
    params = []
    for (fan_in, fan_out) in dims:
        key, kw, kb = jax.random.split(key, 3)
        bound = 1.0 / jnp.sqrt(float(fan_in))
        w = jax.random.uniform(kw, (fan_in, fan_out), jnp.float32, -bound, bound)
        b = jax.random.uniform(kb, (1, fan_out), jnp.float32, -bound, bound)
        params.append((w, b))
    return params


def net_forward_ref(x, params, *, bf16_matmul=True):
    """Plain-JAX reference. bf16_matmul=True mirrors the kernel's precision."""
    h = x
    for idx, (w, b) in enumerate(params):
        if bf16_matmul and idx < 3:
            z = jnp.dot(h.astype(jnp.bfloat16), w.astype(jnp.bfloat16),
                        preferred_element_type=jnp.float32)
        else:
            z = jnp.dot(h, w)
        h = jnp.maximum(z + b, 0.0)
    return jax.nn.sigmoid(h)


if __name__ == "__main__":
    key = jax.random.PRNGKey(0)
    k_x, k_p = jax.random.split(key)

    batch, features = 8, 32
    x = jax.random.normal(k_x, (batch, features), jnp.float32)
    params = init_params(k_p, features)
    prepared = prepare_params(params)   # one-time pad/cast, off the hot path

    out = jax.block_until_ready(net_forward(x, prepared))
    assert out.shape == (batch, 2)

    ref_bf16 = net_forward_ref(x, params, bf16_matmul=True)
    ref_f32 = net_forward_ref(x, params, bf16_matmul=False)
    assert jnp.allclose(out, ref_bf16, atol=2e-3, rtol=1e-3), "mismatch vs bf16 ref"
    assert jnp.allclose(out, ref_f32, atol=3e-2, rtol=0.0), "mismatch vs f32 ref"

    print("KERNEL_OK")
</pallas_src>

<mosaic_0001>
module attributes {stable_mosaic.version = 11 : i64} {
  func.func @mlp_kernel(%arg0: i32, %arg1: memref<8x32xf32, #tpu.memory_space<vmem>>, %arg2: memref<32x256xbf16, #tpu.memory_space<vmem>>, %arg3: memref<1x256xf32, #tpu.memory_space<vmem>>, %arg4: memref<256x256xbf16, #tpu.memory_space<vmem>>, %arg5: memref<1x256xf32, #tpu.memory_space<vmem>>, %arg6: memref<256x128xbf16, #tpu.memory_space<vmem>>, %arg7: memref<1x128xf32, #tpu.memory_space<vmem>>, %arg8: memref<2x128xf32, #tpu.memory_space<vmem>>, %arg9: memref<1x2xf32, #tpu.memory_space<vmem>>, %arg10: memref<8x2xf32, #tpu.memory_space<vmem>>) attributes {dimension_semantics = [#tpu.dimension_semantics<parallel>], iteration_bounds = array<i64: 1>, scalar_prefetch = 0 : i64, scratch_operands = 0 : i64, tpu.core_type = #tpu.core_type<tc>, window_params = [{transform_indices = @transform_0, window_bounds = array<i64: 8, 32>}, {pipeline_mode = #tpu.pipeline_mode<synchronous>, transform_indices = @transform_1, window_bounds = array<i64: 32, 256>}, {pipeline_mode = #tpu.pipeline_mode<synchronous>, transform_indices = @transform_2, window_bounds = array<i64: 1, 256>}, {pipeline_mode = #tpu.pipeline_mode<synchronous>, transform_indices = @transform_3, window_bounds = array<i64: 256, 256>}, {pipeline_mode = #tpu.pipeline_mode<synchronous>, transform_indices = @transform_4, window_bounds = array<i64: 1, 256>}, {pipeline_mode = #tpu.pipeline_mode<synchronous>, transform_indices = @transform_5, window_bounds = array<i64: 256, 128>}, {pipeline_mode = #tpu.pipeline_mode<synchronous>, transform_indices = @transform_6, window_bounds = array<i64: 1, 128>}, {pipeline_mode = #tpu.pipeline_mode<synchronous>, transform_indices = @transform_7, window_bounds = array<i64: 2, 128>}, {pipeline_mode = #tpu.pipeline_mode<synchronous>, transform_indices = @transform_8, window_bounds = array<i64: 1, 2>}, {transform_indices = @transform_9, window_bounds = array<i64: 8, 2>}]} {
    %c0 = arith.constant 0 : index
    %c0_0 = arith.constant 0 : index
    %0 = vector.load %arg1[%c0, %c0_0] : memref<8x32xf32, #tpu.memory_space<vmem>>, vector<8x32xf32>
    %1 = arith.truncf %0 : vector<8x32xf32> to vector<8x32xbf16>
    %c0_1 = arith.constant 0 : index
    %c0_2 = arith.constant 0 : index
    %2 = vector.load %arg2[%c0_1, %c0_2] : memref<32x256xbf16, #tpu.memory_space<vmem>>, vector<32x256xbf16>
    %cst = arith.constant dense<0.000000e+00> : vector<8x256xf32>
    %3 = tpu.matmul %1, %2, %cst {dimension_numbers = #tpu.dot_dimension_numbers<[1], [0], [0], [1], [0, 0, 1, 1], [], []>} : vector<8x32xbf16>, vector<32x256xbf16>, vector<8x256xf32> -> vector<8x256xf32>
    %c0_3 = arith.constant 0 : index
    %c0_4 = arith.constant 0 : index
    %4 = vector.load %arg3[%c0_3, %c0_4] : memref<1x256xf32, #tpu.memory_space<vmem>>, vector<1x256xf32>
    %5 = vector.broadcast %4 : vector<1x256xf32> to vector<8x256xf32>
    %6 = arith.addf %3, %5 : vector<8x256xf32>
    %cst_5 = arith.constant 0.000000e+00 : f32
    %7 = vector.broadcast %cst_5 : f32 to vector<8x256xf32>
    %8 = arith.maximumf %6, %7 : vector<8x256xf32>
    %9 = arith.truncf %8 : vector<8x256xf32> to vector<8x256xbf16>
    %c0_6 = arith.constant 0 : index
    %c0_7 = arith.constant 0 : index
    %10 = vector.load %arg4[%c0_6, %c0_7] : memref<256x256xbf16, #tpu.memory_space<vmem>>, vector<256x256xbf16>
    %cst_8 = arith.constant dense<0.000000e+00> : vector<8x256xf32>
    %11 = tpu.matmul %9, %10, %cst_8 {dimension_numbers = #tpu.dot_dimension_numbers<[1], [0], [0], [1], [0, 0, 1, 1], [], []>} : vector<8x256xbf16>, vector<256x256xbf16>, vector<8x256xf32> -> vector<8x256xf32>
    %c0_9 = arith.constant 0 : index
    %c0_10 = arith.constant 0 : index
    %12 = vector.load %arg5[%c0_9, %c0_10] : memref<1x256xf32, #tpu.memory_space<vmem>>, vector<1x256xf32>
    %13 = vector.broadcast %12 : vector<1x256xf32> to vector<8x256xf32>
    %14 = arith.addf %11, %13 : vector<8x256xf32>
    %cst_11 = arith.constant 0.000000e+00 : f32
    %15 = vector.broadcast %cst_11 : f32 to vector<8x256xf32>
    %16 = arith.maximumf %14, %15 : vector<8x256xf32>
    %17 = arith.truncf %16 : vector<8x256xf32> to vector<8x256xbf16>
    %c0_12 = arith.constant 0 : index
    %c0_13 = arith.constant 0 : index
    %18 = vector.load %arg6[%c0_12, %c0_13] : memref<256x128xbf16, #tpu.memory_space<vmem>>, vector<256x128xbf16>
    %cst_14 = arith.constant dense<0.000000e+00> : vector<8x128xf32>
    %19 = tpu.matmul %17, %18, %cst_14 {dimension_numbers = #tpu.dot_dimension_numbers<[1], [0], [0], [1], [0, 0, 1, 1], [], []>} : vector<8x256xbf16>, vector<256x128xbf16>, vector<8x128xf32> -> vector<8x128xf32>
    %c0_15 = arith.constant 0 : index
    %c0_16 = arith.constant 0 : index
    %20 = vector.load %arg7[%c0_15, %c0_16] : memref<1x128xf32, #tpu.memory_space<vmem>>, vector<1x128xf32>
    %21 = vector.broadcast %20 : vector<1x128xf32> to vector<8x128xf32>
    %22 = arith.addf %19, %21 : vector<8x128xf32>
    %cst_17 = arith.constant 0.000000e+00 : f32
    %23 = vector.broadcast %cst_17 : f32 to vector<8x128xf32>
    %24 = arith.maximumf %22, %23 : vector<8x128xf32>
    %c0_18 = arith.constant 0 : index
    %c0_19 = arith.constant 0 : index
    %25 = vector.load %arg8[%c0_18, %c0_19] : memref<2x128xf32, #tpu.memory_space<vmem>>, vector<1x128xf32>
    %26 = vector.broadcast %25 : vector<1x128xf32> to vector<8x128xf32>
    %27 = arith.mulf %24, %26 : vector<8x128xf32>
    %cst_20 = arith.constant dense<0.000000e+00> : vector<8xf32>
    %28 = vector.multi_reduction <add>, %27, %cst_20 [1] : vector<8x128xf32> to vector<8xf32>
    %29 = vector.shape_cast %28 : vector<8xf32> to vector<8x1xf32>
    %c1 = arith.constant 1 : index
    %c0_21 = arith.constant 0 : index
    %30 = vector.load %arg8[%c1, %c0_21] : memref<2x128xf32, #tpu.memory_space<vmem>>, vector<1x128xf32>
    %31 = vector.broadcast %30 : vector<1x128xf32> to vector<8x128xf32>
    %32 = arith.mulf %24, %31 : vector<8x128xf32>
    %cst_22 = arith.constant dense<0.000000e+00> : vector<8xf32>
    %33 = vector.multi_reduction <add>, %32, %cst_22 [1] : vector<8x128xf32> to vector<8xf32>
    %34 = vector.shape_cast %33 : vector<8xf32> to vector<8x1xf32>
    %35 = tpu.concatenate %29, %34 in 1 : vector<8x1xf32>, vector<8x1xf32> -> vector<8x2xf32>
    %c0_23 = arith.constant 0 : index
    %c0_24 = arith.constant 0 : index
    %36 = vector.load %arg9[%c0_23, %c0_24] : memref<1x2xf32, #tpu.memory_space<vmem>>, vector<1x2xf32>
    %37 = vector.broadcast %36 : vector<1x2xf32> to vector<8x2xf32>
    %38 = arith.addf %35, %37 : vector<8x2xf32>
    %cst_25 = arith.constant 0.000000e+00 : f32
    %39 = vector.broadcast %cst_25 : f32 to vector<8x2xf32>
    %40 = arith.maximumf %38, %39 : vector<8x2xf32>
    %41 = arith.negf %40 : vector<8x2xf32>
    %42 = math.exp %41 : vector<8x2xf32>
    %cst_26 = arith.constant 1.000000e+00 : f32
    %43 = vector.broadcast %cst_26 : f32 to vector<8x2xf32>
    %44 = arith.addf %43, %42 : vector<8x2xf32>
    %45 = arith.divf %43, %44 : vector<8x2xf32>
    %c0_27 = arith.constant 0 : index
    %c0_28 = arith.constant 0 : index
    %46 = vector.load %arg10[%c0_27, %c0_28] : memref<8x2xf32, #tpu.memory_space<vmem>>, vector<8x2xf32>
    tpu.vector_store %arg10[%c0_27, %c0_28], %45 {strides = array<i32>} : memref<8x2xf32, #tpu.memory_space<vmem>>, vector<8x2xf32>,
    return
  }
  func.func @transform_0(%arg0: i32) -> (i32, i32) {
    %c0_i32 = arith.constant 0 : i32
    %c0_i32_0 = arith.constant 0 : i32
    return %arg0, %c0_i32 : i32, i32
  }
  func.func @transform_1(%arg0: i32) -> (i32, i32) {
    %c0_i32 = arith.constant 0 : i32
    %c0_i32_0 = arith.constant 0 : i32
    %c0_i32_1 = arith.constant 0 : i32
    return %c0_i32, %c0_i32_0 : i32, i32
  }
  func.func @transform_2(%arg0: i32) -> (i32, i32) {
    %c0_i32 = arith.constant 0 : i32
    %c0_i32_0 = arith.constant 0 : i32
    %c0_i32_1 = arith.constant 0 : i32
    return %c0_i32, %c0_i32_0 : i32, i32
  }
  func.func @transform_3(%arg0: i32) -> (i32, i32) {
    %c0_i32 = arith.constant 0 : i32
    %c0_i32_0 = arith.constant 0 : i32
    %c0_i32_1 = arith.constant 0 : i32
    return %c0_i32, %c0_i32_0 : i32, i32
  }
  func.func @transform_4(%arg0: i32) -> (i32, i32) {
    %c0_i32 = arith.constant 0 : i32
    %c0_i32_0 = arith.constant 0 : i32
    %c0_i32_1 = arith.constant 0 : i32
    return %c0_i32, %c0_i32_0 : i32, i32
  }
  func.func @transform_5(%arg0: i32) -> (i32, i32) {
    %c0_i32 = arith.constant 0 : i32
    %c0_i32_0 = arith.constant 0 : i32
    %c0_i32_1 = arith.constant 0 : i32
    return %c0_i32, %c0_i32_0 : i32, i32
  }
  func.func @transform_6(%arg0: i32) -> (i32, i32) {
    %c0_i32 = arith.constant 0 : i32
    %c0_i32_0 = arith.constant 0 : i32
    %c0_i32_1 = arith.constant 0 : i32
    return %c0_i32, %c0_i32_0 : i32, i32
  }
  func.func @transform_7(%arg0: i32) -> (i32, i32) {
    %c0_i32 = arith.constant 0 : i32
    %c0_i32_0 = arith.constant 0 : i32
    %c0_i32_1 = arith.constant 0 : i32
    return %c0_i32, %c0_i32_0 : i32, i32
  }
  func.func @transform_8(%arg0: i32) -> (i32, i32) {
    %c0_i32 = arith.constant 0 : i32
    %c0_i32_0 = arith.constant 0 : i32
    %c0_i32_1 = arith.constant 0 : i32
    return %c0_i32, %c0_i32_0 : i32, i32
  }
  func.func @transform_9(%arg0: i32) -> (i32, i32) {
    %c0_i32 = arith.constant 0 : i32
    %c0_i32_0 = arith.constant 0 : i32
    return %arg0, %c0_i32 : i32, i32
  }
}

</mosaic_0001>

<bundles_post_ra>
// kernel: net_forward.1
= control target key start
LH: loop header
LB: loop body
LE: loop exit
PB: predicated region body
PF: predicated region fallthrough
CT: control target
= control target key end

     0   :  { %14 = vsyncpa [#allocation3], 0  ;;  %s1031_s0 = inlined_call_operand.hbm [shape: f32[8,32], index: 0, kind: input, shape index: {}]   ;;  %s1032_s1 = inlined_call_operand.hbm [shape: bf16[32,256], index: 1, kind: input, shape index: {}]   ;;  %s1033_s2 = inlined_call_operand.vmem [shape: f32[1,256], index: 2, kind: input, shape index: {}]   ;;  %s1034_s3 = inlined_call_operand.hbm [shape: bf16[256,256], index: 3, kind: input, shape index: {}]   ;;  %s1035_s4 = inlined_call_operand.vmem [shape: f32[1,256], index: 4, kind: input, shape index: {}]   ;;  %s1036_s5 = inlined_call_operand.hbm [shape: bf16[256,128], index: 5, kind: input, shape index: {}]   ;;  %s1037_s6 = inlined_call_operand.vmem [shape: f32[1,128], index: 6, kind: input, shape index: {}]   ;;  %s1038_s7 = inlined_call_operand.vmem [shape: f32[2,128], index: 7, kind: input, shape index: {}]   ;;  %s1039_s8 = inlined_call_operand.vmem [shape: f32[1,2], index: 8, kind: input, shape index: {}]   ;;  %s1040_s9 = inlined_call_operand.vmem [shape: f32[8,2], index: 9, kind: output, shape index: {}]  }
   0x1   :  { %15 = vsyncpa [#allocation5], 0 }
   0x2   :  { %16 = vsyncpa [#allocation8], 0  ;;  %s897_s30 = smov [#allocation4]   ;;  %s803_s13 = scalar_lea.hbm %s1032_s1, 512 }
   0x3   :  { %s32_s10 = sshll.u32 %s897_s30, 4  ;;  %p804_p0 = scmp.ne.s32.totalorder %s1032_s1, %s803_s13  ;;  %s33_s10 = int_to_ptr.vmem [resolvable:$true] %s32_s10 }
   0x4   :  { %p807_p1 = scmp.lt.u32.totalorder %s803_s13, %s1032_s1 }
   0x6   :  { %p809_p2 = pnand %p807_p1, %p804_p0 }
   0x8   :  { %812 = shalt.err (!%p809_p2)
}
   0x9   :  { %s813_s18 = scalar_lea.vmem %s33_s10, 512  ;;  %p818_p4 = scmp.lt.s32.totalorder %s33_s10, %s33_s10 }
   0xa   :  { %p814_p3 = scmp.ne.s32.totalorder %s33_s10, %s813_s18  ;;  %p819_p5 = scmp.lt.s32.totalorder %s813_s18, %s813_s18 }
   0xc   :  { %p820_p6 = por %p819_p5, %p818_p4 }
   0xe   :  { %p821_p7 = pnand %p820_p6, %p814_p3 }
  0x10   :  { %824 = shalt.err (!%p821_p7)
}
  0x11   :  { %s898_s19 = smov 128   ;;  %s899_s20 = smov 8  }
  0x12   :  { %38 = dma.hbm_to_vmem [thread:$0]  %s1032_s1, 512, %s33_s10, [#allocation5], %s898_s19, %s898_s19, %s899_s20  }
  0x13   :  { %s900_s23 = smov [#allocation2]   ;;  %s901_s25 = smov [#allocation6]  }
  0x14   :  { %s23_s24 = sshll.u32 %s900_s23, 4  ;;  %s46_s26 = sshll.u32 %s901_s25, 4  ;;  %s24_s24 = int_to_ptr.vmem [resolvable:$true] %s23_s24  ;;  %s47_s26 = int_to_ptr.vmem [resolvable:$true] %s46_s26 }
  0x15   :  { %s825_s29 = scalar_lea.hbm %s1031_s0, 128 }
  0x16   :  { %p826_p8 = scmp.ne.s32.totalorder %s1031_s0, %s825_s29  ;;  %p829_p9 = scmp.lt.u32.totalorder %s825_s29, %s1031_s0 }
  0x18   :  { %p831_p10 = pnand %p829_p9, %p826_p8 }
  0x1a   :  { %834 = shalt.err (!%p831_p10)
}
  0x1b   :  { %s835_s1 = scalar_lea.vmem %s24_s24, 128  ;;  %p840_p12 = scmp.lt.s32.totalorder %s24_s24, %s24_s24 }
  0x1c   :  { %p836_p11 = scmp.ne.s32.totalorder %s24_s24, %s835_s1  ;;  %p841_p13 = scmp.lt.s32.totalorder %s835_s1, %s835_s1 }
  0x1e   :  { %p842_p0 = por %p841_p13, %p840_p12 }
  0x20   :  { %p843_p1 = pnand %p842_p0, %p836_p11 }
  0x22   :  { %846 = shalt.err (!%p843_p1)
}
  0x23   :  { %26 = dma.hbm_to_vmem [thread:$0]  %s1031_s0, 128, %s24_s24, [#allocation3]  }
  0x24   :  { %s847_s17 = scalar_lea.hbm %s1034_s3, 4096 }
  0x25   :  { %p848_p2 = scmp.ne.s32.totalorder %s1034_s3, %s847_s17  ;;  %p851_p3 = scmp.lt.u32.totalorder %s847_s17, %s1034_s3 }
  0x27   :  { %p853_p4 = pnand %p851_p3, %p848_p2 }
  0x29   :  { %856 = shalt.err (!%p853_p4)
}
  0x2a   :  { %s857_s25 = scalar_lea.vmem %s47_s26, 4096  ;;  %p862_p6 = scmp.lt.s32.totalorder %s47_s26, %s47_s26 }
  0x2b   :  { %p858_p5 = scmp.ne.s32.totalorder %s47_s26, %s857_s25  ;;  %p863_p7 = scmp.lt.s32.totalorder %s857_s25, %s857_s25 }
  0x2d   :  { %p864_p8 = por %p863_p7, %p862_p6 }
  0x2f   :  { %p865_p9 = pnand %p864_p8, %p858_p5 }
  0x31   :  { %868 = shalt.err (!%p865_p9)
}
  0x32   :  { %52 = dma.hbm_to_vmem [thread:$0]  %s1034_s3, 4096, %s47_s26, [#allocation5], %s898_s19, %s898_s19, %s899_s20  }
  0x33   :  { %s902_s27 = smov [#allocation7]   ;;  %s869_s11 = scalar_lea.hbm %s1036_s5, 2048 }
  0x34   :  { %s60_s28 = sshll.u32 %s902_s27, 4  ;;  %p870_p10 = scmp.ne.s32.totalorder %s1036_s5, %s869_s11  ;;  %s61_s28 = int_to_ptr.vmem [resolvable:$true] %s60_s28 }
  0x35   :  { %p873_p11 = scmp.lt.u32.totalorder %s869_s11, %s1036_s5 }
  0x37   :  { %p875_p12 = pnand %p873_p11, %p870_p10 }
  0x39   :  { %878 = shalt.err (!%p875_p12)
}
  0x3a   :  { %s879_s14 = scalar_lea.vmem %s61_s28, 2048  ;;  %p884_p0 = scmp.lt.s32.totalorder %s61_s28, %s61_s28 }
  0x3b   :  { %p880_p13 = scmp.ne.s32.totalorder %s61_s28, %s879_s14  ;;  %p885_p1 = scmp.lt.s32.totalorder %s879_s14, %s879_s14 }
  0x3d   :  { %p886_p2 = por %p885_p1, %p884_p0 }
  0x3f   :  { %p887_p3 = pnand %p886_p2, %p880_p13 }
  0x41   :  { %890 = shalt.err (!%p887_p3)
}
  0x42   :  { %s903_s3 = smov 64   ;;  %s904_s19 = smov 4  }
  0x43   :  { %66 = dma.hbm_to_vmem [thread:$0]  %s1036_s5, 2048, %s61_s28, [#allocation8], %s903_s3, %s903_s3, %s904_s19  }
  0x44   :  { %891 = dma.done.wait [#allocation3], 128  }
  0x45   :  { %892 = vsyncadd [#allocation3], 4294967168 }
  0x46   :  { %893 = dma.done.wait [#allocation5], 4608  }
  0x47   :  { %894 = vsyncadd [#allocation5], 4294962688 }
  0x48   :  { %895 = dma.done.wait [#allocation8], 2048  }
  0x49   :  { %896 = vsyncadd [#allocation8], 4294965248  ;;  %v905_v0 = vmov 0   ;;  %v729_v1 = vld [vmem:[#allocation4 + $0x4] ss:$8 sps:$4 sm:$0xff]   ;;  %v86_v5 = vld [vmem:[#allocation2] sm:$0xff]  ;;  %v94_v51 = vlaneseq }
  0x4a   :  { %160 = vmatprep.mubr.bf16.mxu0 %v905_v0  ;;  %v731_v2 = vld [vmem:[#allocation4] ss:$8 sps:$4 sm:$0xff]   ;;  %128 = vmatprep.subr.bf16.mxu0 %v729_v1  ;;  %v732_v3 = vld [vmem:[#allocation4 + $0x14] ss:$8 sps:$4 sm:$0xff]   ;;  %v734_v4 = vld [vmem:[#allocation4 + $0x10] ss:$8 sps:$4 sm:$0xff]   ;;  %v87_v9 = vpack.c.bf16 %v86_v5, %v86_v5 }
  0x4b   :  { %129 = vmatpush1.bf16.msra.mxu0 %v731_v2  ;;  %v735_v6 = vld [vmem:[#allocation6 + $0x4] ss:$8 sps:$4 sm:$0xff]   ;;  %v737_v7 = vld [vmem:[#allocation6] ss:$8 sps:$4 sm:$0xff]   ;;  %v738_v8 = vld [vmem:[#allocation6 + $0x14] ss:$8 sps:$4 sm:$0xff]  }
  0x4c   :  { %130 = vmatprep.subr.bf16.mxu0 %v732_v3  ;;  %377 = vmatprep.subr.bf16.mxu1 %v735_v6  ;;  %v740_v10 = vld [vmem:[#allocation6 + $0x10] ss:$8 sps:$4 sm:$0xff]   ;;  %vm124_vm0 = vcmask 261120   ;;  %v741_v11 = vld [vmem:[#allocation6 + $0x24] ss:$8 sps:$4 sm:$0xff]   ;;  %v95_v52 = vshrl.u32 %v94_v51, 7 }
  0x4d   :  { %378 = vmatpush1.bf16.msra.mxu1 %v737_v7  ;;  %v743_v12 = vld [vmem:[#allocation6 + $0x20] ss:$8 sps:$4 sm:$0xff]   ;;  %v744_v13 = vld [vmem:[#allocation6 + $0x34] ss:$8 sps:$4 sm:$0xff]   ;;  %v746_v14 = vld [vmem:[#allocation6 + $0x30] ss:$8 sps:$4 sm:$0xff]  }
  0x4e   :  { %379 = vmatprep.subr.bf16.mxu1 %v738_v8  ;;  %v747_v15 = vld [vmem:[#allocation6 + $0x44] ss:$8 sps:$4 sm:$0xff]   ;;  %v749_v16 = vld [vmem:[#allocation6 + $0x40] ss:$8 sps:$4 sm:$0xff]   ;;  %v750_v17 = vld [vmem:[#allocation6 + $0x54] ss:$8 sps:$4 sm:$0xff]  }
  0x4f   :  { %131 = vmatpush1.bf16.msra.mxu0 %v734_v4  ;;  %v752_v18 = vld [vmem:[#allocation6 + $0x50] ss:$8 sps:$4 sm:$0xff]   ;;  %v753_v19 = vld [vmem:[#allocation6 + $0x64] ss:$8 sps:$4 sm:$0xff]   ;;  %v755_v20 = vld [vmem:[#allocation6 + $0x60] ss:$8 sps:$4 sm:$0xff]  }
  0x50   :  { %v756_v21 = vld [vmem:[#allocation6 + $0x74] ss:$8 sps:$4 sm:$0xff]   ;;  %v758_v22 = vld [vmem:[#allocation6 + $0x70] ss:$8 sps:$4 sm:$0xff]   ;;  %v759_v23 = vld [vmem:[#allocation6 + $0x84] ss:$8 sps:$4 sm:$0xff]  }
  0x51   :  { %380 = vmatpush1.bf16.msra.mxu1 %v740_v10  ;;  %v761_v24 = vld [vmem:[#allocation6 + $0x80] ss:$8 sps:$4 sm:$0xff]   ;;  %v762_v25 = vld [vmem:[#allocation6 + $0x94] ss:$8 sps:$4 sm:$0xff]   ;;  %v764_v26 = vld [vmem:[#allocation6 + $0x90] ss:$8 sps:$4 sm:$0xff]  }
  0x52   :  { %644 = vmatmul.mubr.msk.bf16.vlgmr.msra.gmra.mrb[0].mxu0 %vm124_vm0, %v87_v9  ;;  %381 = vmatprep.subr.bf16.mxu1 %v741_v11  ;;  %v765_v27 = vld [vmem:[#allocation6 + $0xa4] ss:$8 sps:$4 sm:$0xff]   ;;  %v767_v28 = vld [vmem:[#allocation6 + $0xa0] ss:$8 sps:$4 sm:$0xff]   ;;  %v768_v29 = vld [vmem:[#allocation6 + $0xb4] ss:$8 sps:$4 sm:$0xff]  }
  0x53   :  { %v770_v30 = vld [vmem:[#allocation6 + $0xb0] ss:$8 sps:$4 sm:$0xff]   ;;  %v771_v31 = vld [vmem:[#allocation6 + $0xc4] ss:$8 sps:$4 sm:$0xff]   ;;  %v773_v32 = vld [vmem:[#allocation6 + $0xc0] ss:$8 sps:$4 sm:$0xff]  }
  0x54   :  { %v774_v33 = vld [vmem:[#allocation6 + $0xd4] ss:$8 sps:$4 sm:$0xff]   ;;  %v776_v34 = vld [vmem:[#allocation6 + $0xd0] ss:$8 sps:$4 sm:$0xff]   ;;  %v777_v35 = vld [vmem:[#allocation6 + $0xe4] ss:$8 sps:$4 sm:$0xff]  }
  0x55   :  { %382 = vmatpush1.bf16.msra.mxu1 %v743_v12  ;;  %v779_v36 = vld [vmem:[#allocation6 + $0xe0] ss:$8 sps:$4 sm:$0xff]   ;;  %v780_v37 = vld [vmem:[#allocation6 + $0xf4] ss:$8 sps:$4 sm:$0xff]   ;;  %v782_v38 = vld [vmem:[#allocation6 + $0xf0] ss:$8 sps:$4 sm:$0xff]  }
  0x56   :  { %383 = vmatprep.subr.bf16.mxu1 %v744_v13  ;;  %v783_v39 = vld [vmem:[#allocation7 + $0x40] sm:$0xff]   ;;  %v785_v41 = vld [vmem:[#allocation7 + $0x48] sm:$0xff]   ;;  %v787_v43 = vld [vmem:[#allocation7 + $0x50] sm:$0xff]   ;;  %v96_v53 = vsub.s32 0, %v95_v52  ;;  %v100_v55 = vsub.s32 1, %v95_v52  ;;  %vm614_vm1 = vcmask 7168  }
  0x57   :  { %v784_v40 = vld [vmem:[#allocation7] sm:$0xff]   ;;  %698 = vmatprep.subr.bf16.mxu0 %v783_v39  ;;  %v786_v42 = vld [vmem:[#allocation7 + $0x8] sm:$0xff]   ;;  %v788_v44 = vld [vmem:[#allocation7 + $0x10] sm:$0xff]   ;;  %vm631_vm2 = vcmask 15360  }
  0x58   :  { %699 = vmatpush3.bf16.msra.mxu0 %v784_v40  ;;  %v789_v45 = vld [vmem:[#allocation7 + $0x58] sm:$0xff]   ;;  %v791_v47 = vld [vmem:[#allocation7 + $0x60] sm:$0xff]   ;;  %v793_v49 = vld [vmem:[#allocation7 + $0x68] sm:$0xff]  }
  0x59   :  { %384 = vmatpush1.bf16.msra.mxu1 %v746_v14  ;;  %700 = vmatprep.subr.bf16.mxu0 %v785_v41  ;;  %v790_v46 = vld [vmem:[#allocation7 + $0x18] sm:$0xff]   ;;  %v792_v48 = vld [vmem:[#allocation7 + $0x20] sm:$0xff]   ;;  %v794_v50 = vld [vmem:[#allocation7 + $0x28] sm:$0xff]  }
  0x5a   :  { %385 = vmatprep.subr.bf16.mxu1 %v747_v15  ;;  %v92_v54 = vld [vmem:[%s1033_s2] sm:$0x3]  ;;  %v797_v6 = vld [vmem:[#allocation7 + $0x78] sm:$0xff]  }
  0x5b   :  { %v97_v56 = vrot.slane %v92_v54, %v96_v53  ;;  %v101_v57 = vrot.slane %v92_v54, %v100_v55  ;;  %v795_v4 = vld [vmem:[#allocation7 + $0x70] sm:$0xff]   ;;  %v798_v7 = vld [vmem:[#allocation7 + $0x38] sm:$0xff]  }
  0x5c   :  { %701 = vmatpush3.bf16.msra.mxu0 %v786_v42  ;;  %v796_v5 = vld [vmem:[#allocation7 + $0x30] sm:$0xff]  }
  0x5d   :  { %386 = vmatpush1.bf16.msra.mxu1 %v749_v16  ;;  %702 = vmatprep.subr.bf16.mxu0 %v787_v43  ;;  %v205_v8 = vld [vmem:[%s1035_s4] sm:$0x3] }
  0x5e   :  { %387 = vmatprep.subr.bf16.mxu1 %v750_v17  ;;  %v210_v9 = vrot.slane %v205_v8, %v96_v53  ;;  %v214_v10 = vrot.slane %v205_v8, %v100_v55 }
  0x60   :  { %703 = vmatpush3.bf16.msra.mxu0 %v788_v44 }
  0x61   :  { %388 = vmatpush1.bf16.msra.mxu1 %v752_v18  ;;  %704 = vmatprep.subr.bf16.mxu0 %v789_v45 }
  0x62   :  { %389 = vmatprep.subr.bf16.mxu1 %v753_v19 }
  0x64   :  { %705 = vmatpush3.bf16.msra.mxu0 %v790_v46 }
  0x65   :  { %390 = vmatpush1.bf16.msra.mxu1 %v755_v20  ;;  %706 = vmatprep.subr.bf16.mxu0 %v791_v47 }
  0x66   :  { %391 = vmatprep.subr.bf16.mxu1 %v756_v21 }
  0x68   :  { %707 = vmatpush3.bf16.msra.mxu0 %v792_v48 }
  0x69   :  { %392 = vmatpush1.bf16.msra.mxu1 %v758_v22  ;;  %708 = vmatprep.subr.bf16.mxu0 %v793_v49 }
  0x6a   :  { %393 = vmatprep.subr.bf16.mxu1 %v759_v23  ;;  %v677_v23 = vld [vmem:[%s1037_s6] ss:$0 sm:$0xff] }
  0x6c   :  { %709 = vmatpush3.bf16.msra.mxu0 %v794_v50 }
  0x6d   :  { %394 = vmatpush1.bf16.msra.mxu1 %v761_v24  ;;  %710 = vmatprep.subr.bf16.mxu0 %v795_v4 }
  0x6e   :  { %395 = vmatprep.subr.bf16.mxu1 %v762_v25 }
  0x70   :  { %711 = vmatpush3.bf16.msra.mxu0 %v796_v5 }
  0x71   :  { %396 = vmatpush1.bf16.msra.mxu1 %v764_v26  ;;  %712 = vmatprep.subr.bf16.mxu0 %v797_v6 }
  0x72   :  { %397 = vmatprep.subr.bf16.mxu1 %v765_v27 }
  0x74   :  { %713 = vmatpush3.bf16.msra.mxu0 %v798_v7 }
  0x75   :  { %398 = vmatpush1.bf16.msra.mxu1 %v767_v28  ;;  %v694_v28 = vld [vmem:[%s1038_s7] ss:$0 sm:$0xff] }
  0x76   :  { %399 = vmatprep.subr.bf16.mxu1 %v768_v29 }
  0x79   :  { %400 = vmatpush1.bf16.msra.mxu1 %v770_v30 }
  0x7a   :  { %401 = vmatprep.subr.bf16.mxu1 %v771_v31  ;;  %v695_v31 = vld [vmem:[%s1038_s7 + $0x1] ss:$0 sm:$0xff] }
  0x7d   :  { %402 = vmatpush1.bf16.msra.mxu1 %v773_v32 }
  0x7e   :  { %403 = vmatprep.subr.bf16.mxu1 %v774_v33 }
  0x81   :  { %404 = vmatpush1.bf16.msra.mxu1 %v776_v34  ;;  %v696_v34 = vld [vmem:[%s1039_s8] ss:$0 sm:$0xff] }
  0x82   :  { %405 = vmatprep.subr.bf16.mxu1 %v777_v35 }
  0x85   :  { %406 = vmatpush1.bf16.msra.mxu1 %v779_v36 }
  0x86   :  { %407 = vmatprep.subr.bf16.mxu1 %v780_v37 }
  0x89   :  { %408 = vmatpush1.bf16.msra.mxu1 %v782_v38 }
 0x125   :  { %v162_v58 = vpop.f32.mrb[0].mxu0 }
 0x126   :  { %v163_v59 = vadd.f32 %v162_v58, %v97_v56  ;;  %v164_v60 = vpop.f32.mrb[1].mxu0 }
 0x127   :  { %v165_v61 = vadd.f32 %v164_v60, %v101_v57  ;;  %v166_v62 = vpop.f32.mrb[2].mxu0 }
 0x128   :  { %v169_v63 = vmax.f32 %v163_v59, 0.0  ;;  %v167_v0 = vpop.f32.mrb[3].mxu0 }
 0x129   :  { %v170_v1 = vmax.f32 %v165_v61, 0.0 }
 0x12a   :  { %v171_v3 = vpack.c.bf16 %v169_v63, %v169_v63 }
 0x12b   :  { %v172_v2 = vpack.c.bf16 %v170_v1, %v170_v1 }
 0x12d   :  { %409 = vmatprep.mubr.bf16.mxu1 %v172_v2 }
 0x12e   :  { %410 = vmatmul.mubr.bf16.vlgmr.msra.gmra.mrb[0].mxu1 %v171_v3 }
 0x201   :  { %v411_v11 = vpop.f32.mrb[0].mxu1 }
 0x202   :  { %v412_v12 = vadd.f32 %v411_v11, %v210_v9  ;;  %v413_v13 = vpop.f32.mrb[1].mxu1 }
 0x203   :  { %v414_v14 = vadd.f32 %v413_v13, %v214_v10  ;;  %v415_v15 = vpop.f32.mrb[2].mxu1 }
 0x204   :  { %v418_v16 = vmax.f32 %v412_v12, 0.0  ;;  %v416_v17 = vpop.f32.mrb[3].mxu1 }
 0x205   :  { %v419_v18 = vmax.f32 %v414_v14, 0.0 }
 0x206   :  { %v420_v20 = vpack.c.bf16 %v418_v16, %v418_v16 }
 0x207   :  { %v421_v19 = vpack.c.bf16 %v419_v18, %v419_v18 }
 0x209   :  { %589 = vmatprep.mubr.bf16.mxu0 %v421_v19 }
 0x20a   :  { %590 = vmatmul.mubr.bf16.vlgmr.msra.gmra.mrb[4].mxu0 %v420_v20 }
 0x2dd   :  { %v714_v21 = vpop.f32.mrb[4].mxu0 }
 0x2de   :  { %v715_v22 = vpop.f32.mrb[5].mxu0 }
 0x2df   :  { %v716_v24 = vadd.f32 %v715_v22, %v714_v21  ;;  %v717_v25 = vpop.f32.mrb[6].mxu0 }
 0x2e0   :  { %v718_v26 = vpop.f32.mrb[7].mxu0 }
 0x2e1   :  { %v592_v27 = vadd.f32 %v716_v24, %v677_v23 }
 0x2e3   :  { %v597_v29 = vmax.f32 %v592_v27, 0.0 }
 0x2e5   :  { %v603_v30 = vmul.f32 %v694_v28, %v597_v29  ;;  %v611_v32 = vmul.f32 %v695_v31, %v597_v29 }
 0x2e7   :  { %604 = vadd.xlane.f32.xlu0 %v603_v30 }
 0x2eb   :  { %612 = vadd.xlane.f32.xlu0 %v611_v32 }
 0x374   :  { %v605_v33 = vpop.xlane.xlu0 %604 }
 0x378   :  { %v613_v35 = vpop.xlane.xlu0 %612 }
 0x379   :  { %v615_v36 = vsel %vm614_vm1, %v605_v33, %v613_v35 }
 0x37a   :  { %v623_v37 = vadd.f32 %v696_v34, %v615_v36 }
 0x37c   :  { %v624_v38 = vmax.f32 %v623_v37, 0.0 }
 0x37e   :  { %v697_v39 = vmul.f32 -1.442695, %v624_v38 }
 0x380   :  { %799 = vpow2.f32 %v697_v39 }
 0x38a   :  { %v800_v40 = vpop.eup %799 }
 0x38b   :  { %v628_v41 = vadd.f32 1.0, %v800_v40 }
 0x38d   :  { %801 = vrcp.f32 %v628_v41 }
 0x397   :  { %v802_v42 = vpop.eup %801 }
 0x398   :  { %632 = vst.msk [vmem:[%s1040_s9] sm:$0xff] %vm631_vm2, %v802_v42 }
 0x399   :  { %637 = vsyncpa [#allocation3], 1 }
 0x39a   :  { %638 = vsyncpa [#allocation5], 1 }
 0x39b   :  { %639 = vsyncpa [#allocation8], 1 }

</bundles_post_ra>
